<compile_context>
chip_gen: v6e
topology: v6e:2x2x1
jax: 0.10.0
libtpu: 0.0.40
codegen_flags: <defaults>
</compile_context>

<pallas_src>
import functools

import jax
import jax.numpy as jnp
import numpy as np
from jax.experimental import pallas as pl
from jax.experimental.pallas import tpu as pltpu

# Finite stand-ins for -inf so fully-masked rows never produce NaN:
#   running max is initialised to _M_INIT; masked logits get _M_MASK added.
#   Since _M_MASK < _M_INIT, exp(masked_logit - m_new) <= exp(-1e30) == 0
#   always, and exp(_M_INIT - _M_INIT) == 1 keeps the correction factor sane.
_M_INIT = -1e30
_M_MASK = -2e30


def _round_up(x, m):
    return ((x + m - 1) // m) * m


def _project_kernel(x_ref, w_ref, one_ref, feat_ref):
    # feat = x @ W_packed for all heads at once (bf16 operands, f32 accumulate).
    # one_ref puts a literal 1.0 into each head's extra "denominator" column;
    # that column of W_packed is all zeros, so the add is exact.
    proj = jnp.dot(x_ref[...], w_ref[...], preferred_element_type=jnp.float32)
    feat_ref[...] = (proj + one_ref[...]).astype(feat_ref.dtype)


def _gat_attn_kernel(featd_ref, feats_ref, alT_ref, ar_ref, adj_ref, b_ref,
                     o_ref, er_scr, m_scr, acc_scr,
                     *, num_heads, head_dim, dslab):
    # featd_ref : (Tdst, HDp) bf16   projected features, dst tile
    # feats_ref : (Tsrc, HDp) bf16   projected features, src tile
    # alT_ref   : (H, HDp)    bf16   attn_l packed so el is an MXU matmul
    # ar_ref    : (HDp, H)    bf16   attn_r packed so er is an MXU matmul
    # adj_ref   : (Tdst, Tsrc) int8  adjacency tile (adj[dst, src])
    # b_ref     : (1, HDp)    f32    packed bias (0 in the denominator columns)
    # o_ref     : (Tdst, HDp) f32    packed output (written once, lane-dense)
    # er_scr    : (Tdst, H)   f32    destination attention term (per dst tile)
    # m_scr     : (H, Tdst, 1) f32   running max
    # acc_scr   : (Tdst, HDp) f32    packed accumulator; column h*DS + D of
    #                                each head slab accumulates the softmax
    #                                denominator (via the ones column of feat)
    H, D, DS = num_heads, head_dim, dslab
    j = pl.program_id(1)

    @pl.when(j == 0)
    def _init():
        # er only depends on the dst tile -> compute once per dst tile.
        er_scr[...] = jnp.dot(featd_ref[...], ar_ref[...],
                              preferred_element_type=jnp.float32)   # (Tdst, H)
        m_scr[...] = jnp.full(m_scr.shape, _M_INIT, jnp.float32)
        acc_scr[...] = jnp.zeros(acc_scr.shape, jnp.float32)

    feat_s = feats_ref[...]                                    # (Tsrc, HDp) bf16
    # el for this src tile, all heads, already row-oriented:
    # el_t[h, s] = <attn_l[h], feat_src[s, head h]>  (ones column hits zeros)
    el_t = jnp.einsum("hk,sk->hs", alT_ref[...], feat_s,
                      preferred_element_type=jnp.float32)       # (H, Tsrc) f32
    er = er_scr[...]                                            # (Tdst, H) f32
    # Additive mask bias: 0 where there is an edge, -2e30 otherwise.
    mbias = jnp.where(adj_ref[...].astype(jnp.int32) > 0,
                      0.0, _M_MASK)                             # (Tdst, Tsrc) f32

    for h in range(H):                                          # H is small/static
        c0 = h * DS
        s = er[:, h:h + 1] + el_t[h:h + 1, :]                   # (Tdst, Tsrc)
        e = jnp.maximum(s, 0.2 * s) + mbias                     # leaky_relu + mask

        m_prev = m_scr[h]                                       # (Tdst, 1)
        m_new = jnp.maximum(m_prev, jnp.max(e, axis=1, keepdims=True))
        corr = jnp.exp(m_prev - m_new)                          # (Tdst, 1)
        p = jnp.exp(e - m_new)                                  # masked -> exactly 0

        # One matmul yields both p @ feat_h (cols 0..D-1) and the row-sum of p
        # (col D, against the constant-1.0 column) -> no XLU row-sum needed.
        rhs = feat_s[:, c0:c0 + DS]                             # (Tsrc, DS) bf16
        pv = jnp.dot(p.astype(jnp.bfloat16), rhs,
                     preferred_element_type=jnp.float32)        # (Tdst, DS) f32
        acc_scr[:, c0:c0 + DS] = corr * acc_scr[:, c0:c0 + DS] + pv
        m_scr[h] = m_new

    @pl.when(j == pl.num_programs(1) - 1)
    def _finalize():
        for h in range(H):
            c0 = h * DS
            slab = acc_scr[:, c0:c0 + DS]                       # (Tdst, DS)
            l_h = slab[:, D:D + 1]                              # softmax denom
            # nodes with no in-edges: l == 0 -> alpha = 0 -> out = bias
            inv = pl.reciprocal(jnp.where(l_h > 0, l_h, 1.0), approx=True)
            acc_scr[:, c0:c0 + DS] = slab * inv
        rst = acc_scr[...] + b_ref[...]                         # (Tdst, HDp)
        # ELU (alpha=1.0); single lane-dense store of the whole packed block.
        o_ref[...] = jnp.where(rst > 0, rst, jnp.exp(rst) - 1.0)


def gat_layer(x, adj, W, attn_l, attn_r, bias, *, node_tile=None):
    """x: (N, IN) f32; adj: (N, N), adj[dst, src] != 0 means edge src->dst;
    W: (H, IN, D); attn_l/attn_r/bias: (H, D).
    Returns elu(GATConv(g, x)) with shape (N, H, D)."""
    N, IN = x.shape
    H, _, D = W.shape
    DS = _round_up(D + 1, 16)           # per-head slab: D features + 1 denom col
    HDS = H * DS
    HDp = _round_up(HDS, 128)           # lane-dense packed head*slab dim

    if node_tile is None:
        node_tile = 256 if N > 1024 else 128
    T = node_tile
    Np = _round_up(N, T)
    n_tiles = Np // T

    f32, bf16 = jnp.float32, jnp.bfloat16

    # ---- host-side layout prep (padding / packing, not compute hoisting) ----
    xp = jnp.zeros((Np, IN), bf16).at[:N].set(x.astype(bf16))
    adj_i8 = jnp.zeros((Np, Np), jnp.int8).at[:N, :N].set(
        (adj > 0).astype(jnp.int8))

    Wp = jnp.zeros((IN, HDp), f32)
    alT_m = jnp.zeros((H, HDp), f32)
    ar_m = jnp.zeros((HDp, H), f32)
    bias_p = jnp.zeros((1, HDp), f32)
    ones_row = jnp.zeros((1, HDp), f32)
    for h in range(H):
        c0 = h * DS
        Wp = Wp.at[:, c0:c0 + D].set(W[h])
        alT_m = alT_m.at[h, c0:c0 + D].set(attn_l[h])
        ar_m = ar_m.at[c0:c0 + D, h].set(attn_r[h])
        bias_p = bias_p.at[0, c0:c0 + D].set(bias[h])
        ones_row = ones_row.at[0, c0 + D].set(1.0)   # denominator column
    Wp = Wp.astype(bf16)
    alT_m = alT_m.astype(bf16)
    ar_m = ar_m.astype(bf16)

    # ---- kernel 1: head-fused feature projection (one wide bf16 matmul) ----
    feat = pl.pallas_call(
        _project_kernel,
        out_shape=jax.ShapeDtypeStruct((Np, HDp), bf16),
        grid_spec=pltpu.PrefetchScalarGridSpec(
            num_scalar_prefetch=0,
            grid=(n_tiles,),
            in_specs=[
                pl.BlockSpec((T, IN), lambda n: (n, 0)),
                pl.BlockSpec((IN, HDp), lambda n: (0, 0)),
                pl.BlockSpec((1, HDp), lambda n: (0, 0)),
            ],
            out_specs=pl.BlockSpec((T, HDp), lambda n: (n, 0)),
        ),
        compiler_params=pltpu.CompilerParams(
            dimension_semantics=("parallel",)),
    )(xp, Wp, ones_row)

    # ---- kernel 2: dst-tiled, src-streamed online-softmax attention ----
    kernel = functools.partial(_gat_attn_kernel,
                               num_heads=H, head_dim=D, dslab=DS)
    out_p = pl.pallas_call(
        kernel,
        out_shape=jax.ShapeDtypeStruct((Np, HDp), f32),
        grid_spec=pltpu.PrefetchScalarGridSpec(
            num_scalar_prefetch=0,
            grid=(n_tiles, n_tiles),                  # (dst tiles, src tiles)
            in_specs=[
                pl.BlockSpec((T, HDp), lambda i, j: (i, 0)),   # feat, dst tile
                pl.BlockSpec((T, HDp), lambda i, j: (j, 0)),   # feat, src tile
                pl.BlockSpec((H, HDp), lambda i, j: (0, 0)),   # attn_l^T packed
                pl.BlockSpec((HDp, H), lambda i, j: (0, 0)),   # attn_r packed
                pl.BlockSpec((T, T), lambda i, j: (i, j)),     # adj tile (int8)
                pl.BlockSpec((1, HDp), lambda i, j: (0, 0)),   # bias packed
            ],
            out_specs=pl.BlockSpec((T, HDp), lambda i, j: (i, 0)),
            scratch_shapes=[
                pltpu.VMEM((T, H), f32),        # er  (per dst tile, per head)
                pltpu.VMEM((H, T, 1), f32),     # running max
                pltpu.VMEM((T, HDp), f32),      # packed accumulator (+ denom col)
            ],
        ),
        compiler_params=pltpu.CompilerParams(
            dimension_semantics=("parallel", "arbitrary")),
    )(feat, feat, alT_m, ar_m, adj_i8, bias_p)

    # unpack lane-dense (Np, HDp) -> (N, H, D), dropping denominator columns
    return out_p[:N, :HDS].reshape(N, H, DS)[:, :, :D]


def gat_layer_ref(x, adj, W, attn_l, attn_r, bias):
    """Pure-JAX f32 reference of the same math (for verification)."""
    feat = jnp.einsum("ni,hid->hnd", x, W)                     # (H, N, D)
    el = jnp.sum(feat * attn_l[:, None, :], axis=-1)           # (H, N)  src
    er = jnp.sum(feat * attn_r[:, None, :], axis=-1)           # (H, N)  dst
    e = er[:, :, None] + el[:, None, :]                        # (H, Ndst, Nsrc)
    e = jnp.where(e > 0, e, 0.2 * e)
    mask = (adj > 0)[None, :, :]
    e_m = jnp.where(mask, e, -1e30)
    m = jnp.max(e_m, axis=-1, keepdims=True)
    p = jnp.where(mask, jnp.exp(e_m - m), 0.0)
    denom = jnp.sum(p, axis=-1, keepdims=True)
    alpha = p / jnp.where(denom > 0, denom, 1.0)
    out = jnp.einsum("hij,hjd->hid", alpha, feat)              # (H, N, D)
    rst = out + bias[:, None, :]
    h = jnp.where(rst > 0, rst, jnp.exp(rst) - 1.0)
    return jnp.transpose(h, (1, 0, 2))                         # (N, H, D)


if __name__ == "__main__":
    def _run_case(key, N, IN, D, H, density):
        k_x, k_w, k_al, k_ar, k_b, k_adj = jax.random.split(key, 6)
        x = jax.random.normal(k_x, (N, IN), dtype=jnp.float32)
        W = jax.random.normal(k_w, (H, IN, D), dtype=jnp.float32) * 0.1
        attn_l = jax.random.normal(k_al, (H, D), dtype=jnp.float32) * 0.1
        attn_r = jax.random.normal(k_ar, (H, D), dtype=jnp.float32) * 0.1
        bias = jax.random.normal(k_b, (H, D), dtype=jnp.float32) * 0.1
        # Dense adjacency adj[dst, src]; add self-loops so every node has an
        # in-edge (DGL GATConv assumes no zero-in-degree nodes).
        adj = (jax.random.uniform(k_adj, (N, N)) < density).astype(jnp.float32)
        adj = jnp.maximum(adj, jnp.eye(N, dtype=jnp.float32))

        out = jax.block_until_ready(gat_layer(x, adj, W, attn_l, attn_r, bias))
        ref = gat_layer_ref(x, adj, W, attn_l, attn_r, bias)
        # bf16 MXU operands (x, W, feat, alpha) vs f32 reference -> relaxed tol;
        # softmax max/exp/accumulate math itself stays f32 in the kernel.
        np.testing.assert_allclose(np.asarray(out), np.asarray(ref),
                                   rtol=3e-2, atol=3e-2)
        assert out.shape == (N, H, D)

    key = jax.random.PRNGKey(0)
    k1, k2 = jax.random.split(key)
    # Small case from the module spec (single tile after padding to 128).
    _run_case(k1, N=16, IN=16, D=16, H=4, density=0.3)
    # Slightly larger case exercising multi-tile online softmax + padding
    # (padded N = 256, grid = (2, 2)).
    _run_case(k2, N=200, IN=32, D=16, H=4, density=0.2)
    print("KERNEL_OK")
</pallas_src>

<mosaic_0001>
module attributes {stable_mosaic.version = 11 : i64} {
  func.func @_project_kernel(%arg0: i32, %arg1: memref<128x16xbf16, #tpu.memory_space<vmem>>, %arg2: memref<16x128xbf16, #tpu.memory_space<vmem>>, %arg3: memref<1x128xf32, #tpu.memory_space<vmem>>, %arg4: memref<128x128xbf16, #tpu.memory_space<vmem>>) attributes {dimension_semantics = [#tpu.dimension_semantics<parallel>], iteration_bounds = array<i64: 1>, scalar_prefetch = 0 : i64, scratch_operands = 0 : i64, tpu.core_type = #tpu.core_type<tc>, window_params = [{transform_indices = @transform_0, window_bounds = array<i64: 128, 16>}, {pipeline_mode = #tpu.pipeline_mode<synchronous>, transform_indices = @transform_1, window_bounds = array<i64: 16, 128>}, {pipeline_mode = #tpu.pipeline_mode<synchronous>, transform_indices = @transform_2, window_bounds = array<i64: 1, 128>}, {transform_indices = @transform_3, window_bounds = array<i64: 128, 128>}]} {
    %c0 = arith.constant 0 : index
    %c0_0 = arith.constant 0 : index
    %0 = vector.load %arg1[%c0, %c0_0] : memref<128x16xbf16, #tpu.memory_space<vmem>>, vector<128x16xbf16>
    %c0_1 = arith.constant 0 : index
    %c0_2 = arith.constant 0 : index
    %1 = vector.load %arg2[%c0_1, %c0_2] : memref<16x128xbf16, #tpu.memory_space<vmem>>, vector<16x128xbf16>
    %cst = arith.constant dense<0.000000e+00> : vector<128x128xf32>
    %2 = tpu.matmul %0, %1, %cst {dimension_numbers = #tpu.dot_dimension_numbers<[1], [0], [0], [1], [0, 0, 1, 1], [], []>} : vector<128x16xbf16>, vector<16x128xbf16>, vector<128x128xf32> -> vector<128x128xf32>
    %c0_3 = arith.constant 0 : index
    %c0_4 = arith.constant 0 : index
    %3 = vector.load %arg3[%c0_3, %c0_4] : memref<1x128xf32, #tpu.memory_space<vmem>>, vector<1x128xf32>
    %4 = vector.broadcast %3 : vector<1x128xf32> to vector<128x128xf32>
    %5 = arith.addf %2, %4 : vector<128x128xf32>
    %6 = arith.truncf %5 : vector<128x128xf32> to vector<128x128xbf16>
    %c0_5 = arith.constant 0 : index
    %c0_6 = arith.constant 0 : index
    %7 = vector.load %arg4[%c0_5, %c0_6] : memref<128x128xbf16, #tpu.memory_space<vmem>>, vector<128x128xbf16>
    tpu.vector_store %arg4[%c0_5, %c0_6], %6 {strides = array<i32>} : memref<128x128xbf16, #tpu.memory_space<vmem>>, vector<128x128xbf16>,
    return
  }
  func.func @transform_0(%arg0: i32) -> (i32, i32) {
    %c0_i32 = arith.constant 0 : i32
    %c0_i32_0 = arith.constant 0 : i32
    return %arg0, %c0_i32 : i32, i32
  }
  func.func @transform_1(%arg0: i32) -> (i32, i32) {
    %c0_i32 = arith.constant 0 : i32
    %c0_i32_0 = arith.constant 0 : i32
    %c0_i32_1 = arith.constant 0 : i32
    return %c0_i32, %c0_i32_0 : i32, i32
  }
  func.func @transform_2(%arg0: i32) -> (i32, i32) {
    %c0_i32 = arith.constant 0 : i32
    %c0_i32_0 = arith.constant 0 : i32
    %c0_i32_1 = arith.constant 0 : i32
    return %c0_i32, %c0_i32_0 : i32, i32
  }
  func.func @transform_3(%arg0: i32) -> (i32, i32) {
    %c0_i32 = arith.constant 0 : i32
    %c0_i32_0 = arith.constant 0 : i32
    return %arg0, %c0_i32 : i32, i32
  }
}

</mosaic_0001>

<bundles_post_ra>
// kernel: tpu_custom_call.1
= control target key start
LH: loop header
LB: loop body
LE: loop exit
PB: predicated region body
PF: predicated region fallthrough
CT: control target
= control target key end

     0   :  { %vm87_vm0 = vcmask 130048   ;;  %s529_s0 = inlined_call_operand.vmem [shape: bf16[128,16], index: 0, kind: input, shape index: {}]   ;;  %s530_s1 = inlined_call_operand.vmem [shape: bf16[16,128], index: 1, kind: input, shape index: {}]   ;;  %s531_s2 = inlined_call_operand.vmem [shape: f32[1,128], index: 2, kind: input, shape index: {}]   ;;  %s532_s3 = inlined_call_operand.hbm [shape: bf16[128,128], index: 3, kind: output, shape index: {}]  }
   0x1   :  { %v434_v0 = vld [vmem:[%s530_s1] sm:$0xff]   ;;  %v437_v3 = vld [vmem:[%s529_s0 + $0x8] sm:$0xff]   ;;  %v439_v5 = vld [vmem:[%s529_s0 + $0x10] sm:$0xff]  }
   0x2   :  { %v435_v1 = vld [vmem:[%s529_s0] sm:$0xff]   ;;  %411 = vmatprep.subr.bf16.mxu0 %v434_v0  ;;  %429 = vmatprep.subr.bf16.mxu1 %v434_v0  ;;  %v438_v4 = vld [vmem:[%s529_s0 + $0x28] sm:$0xff]   ;;  %v440_v6 = vld [vmem:[%s529_s0 + $0x30] sm:$0xff]  }
   0x3   :  { %v436_v2 = vld [vmem:[%s529_s0 + $0x20] sm:$0xff]   ;;  %412 = vmatpush3.bf16.msra.mxu0 %v434_v0  ;;  %430 = vmatpush3.bf16.msra.mxu1 %v434_v0 }
   0x4   :  { %413 = vmatprep.mubr.msk.bf16.mxu0 %vm87_vm0, %v435_v1  ;;  %421 = vmatprep.mubr.msk.bf16.mxu1 %vm87_vm0, %v436_v2 }
   0x6   :  { %414 = vmatmul.mubr.msk.bf16.vlgmr.msra.gmra.mxu0 %vm87_vm0, %v437_v3  ;;  %422 = vmatmul.mubr.msk.bf16.vlgmr.msra.gmra.mxu1 %vm87_vm0, %v438_v4 }
   0x7   :  { %417 = vmatprep.mubr.msk.bf16.mxu0 %vm87_vm0, %v439_v5  ;;  %425 = vmatprep.mubr.msk.bf16.mxu1 %vm87_vm0, %v440_v6 }
   0x8   :  { %8 = vsyncpa [#allocation3], 0  ;;  %v441_v7 = vld [vmem:[%s529_s0 + $0x18] sm:$0xff]   ;;  %v305_v11 = vld [vmem:[%s531_s2] ss:$0 sm:$0xff] }
   0x9   :  { %v442_v8 = vld [vmem:[%s529_s0 + $0x38] sm:$0xff]   ;;  %s465_s0 = smov [#allocation2]  }
   0xa   :  { %s294_s2 = sshll.u32 %s465_s0, 4  ;;  %s295_s2 = int_to_ptr.vmem [resolvable:$true] %s294_s2 }
   0xb   :  { %s443_s4 = scalar_lea.vmem %s295_s2, 1024  ;;  %p448_p1 = scmp.lt.s32.totalorder %s295_s2, %s295_s2 }
   0xc   :  { %p444_p0 = scmp.ne.s32.totalorder %s295_s2, %s443_s4  ;;  %p449_p2 = scmp.lt.s32.totalorder %s443_s4, %s443_s4 }
   0xe   :  { %418 = vmatmul.mubr.msk.bf16.gmra.mxu0 %vm87_vm0, %v441_v7  ;;  %426 = vmatmul.mubr.msk.bf16.gmra.mxu1 %vm87_vm0, %v442_v8  ;;  %p450_p3 = por %p449_p2, %p448_p1 }
  0x10   :  { %p451_p4 = pnand %p450_p3, %p444_p0 }
  0xc6   :  { %v415_v9 = vpop.f32.mrf.mxu0  ;;  %v423_v10 = vpop.f32.mrf.mxu1 }
  0xc7   :  { %v155_v16 = vadd.f32 %v415_v9, %v305_v11  ;;  %v187_v17 = vadd.f32 %v423_v10, %v305_v11 }
  0xc8   :  { %v146_v12 = vpop.f32.mrf.mxu0  ;;  %v178_v13 = vpop.f32.mrf.mxu1 }
  0xc9   :  { %v147_v20 = vadd.f32 %v305_v11, %v146_v12  ;;  %v179_v21 = vadd.f32 %v305_v11, %v178_v13 }
  0xca   :  { %v416_v14 = vpop.f32.mrf.mxu0  ;;  %v424_v15 = vpop.f32.mrf.mxu1 }
  0xcb   :  { %v158_v18 = vadd.f32 %v416_v14, %v305_v11  ;;  %v190_v19 = vadd.f32 %v424_v15, %v305_v11 }
  0xcc   :  { %v149_v22 = vpop.f32.mrf.mxu0  ;;  %v181_v23 = vpop.f32.mrf.mxu1 }
  0xcd   :  { %v363_v24 = vpack.c.bf16 %v158_v18, %v155_v16  ;;  %v383_v25 = vpack.c.bf16 %v190_v19, %v187_v17  ;;  %v150_v26 = vadd.f32 %v305_v11, %v149_v22  ;;  %v182_v27 = vadd.f32 %v305_v11, %v181_v23 }
  0xce   :  { %v419_v28 = vpop.f32.mrf.mxu0  ;;  %v427_v29 = vpop.f32.mrf.mxu1 }
  0xcf   :  { %395 = vst [vmem:[#allocation2 + $0x8] sm:$0xff] %v363_v24   ;;  %399 = vst [vmem:[#allocation2 + $0x28] sm:$0xff] %v383_v25   ;;  %v358_v30 = vpack.c.bf16 %v150_v26, %v147_v20  ;;  %v378_v31 = vpack.c.bf16 %v182_v27, %v179_v21  ;;  %v171_v36 = vadd.f32 %v419_v28, %v305_v11 }
  0xd0   :  { %v162_v32 = vpop.f32.mrf.mxu0  ;;  %v194_v33 = vpop.f32.mrf.mxu1  ;;  %v203_v37 = vadd.f32 %v427_v29, %v305_v11 }
  0xd1   :  { %359 = vst [vmem:[#allocation2] sm:$0xff] %v358_v30   ;;  %398 = vst [vmem:[#allocation2 + $0x20] sm:$0xff] %v378_v31   ;;  %v163_v40 = vadd.f32 %v305_v11, %v162_v32  ;;  %v195_v41 = vadd.f32 %v305_v11, %v194_v33 }
  0xd2   :  { %v420_v34 = vpop.f32.mrf.mxu0  ;;  %v428_v35 = vpop.f32.mrf.mxu1 }
  0xd3   :  { %v174_v38 = vadd.f32 %v420_v34, %v305_v11  ;;  %v206_v39 = vadd.f32 %v428_v35, %v305_v11 }
  0xd4   :  { %v165_v42 = vpop.f32.mrf.mxu0  ;;  %v197_v43 = vpop.f32.mrf.mxu1 }
  0xd5   :  { %v373_v44 = vpack.c.bf16 %v174_v38, %v171_v36  ;;  %v393_v45 = vpack.c.bf16 %v206_v39, %v203_v37  ;;  %v166_v46 = vadd.f32 %v305_v11, %v165_v42  ;;  %v198_v47 = vadd.f32 %v305_v11, %v197_v43 }
  0xd7   :  { %397 = vst [vmem:[#allocation2 + $0x18] sm:$0xff] %v373_v44   ;;  %401 = vst [vmem:[#allocation2 + $0x38] sm:$0xff] %v393_v45   ;;  %v368_v48 = vpack.c.bf16 %v166_v46, %v163_v40  ;;  %v388_v49 = vpack.c.bf16 %v198_v47, %v195_v41 }
  0xd9   :  { %396 = vst [vmem:[#allocation2 + $0x10] sm:$0xff] %v368_v48   ;;  %400 = vst [vmem:[#allocation2 + $0x30] sm:$0xff] %v388_v49  }
  0xda   :  { %454 = shalt.err (!%p451_p4)
}
  0xdb   :  { %s466_s5 = smov 64   ;;  %s467_s6 = smov 4  }
  0xdc   :  { %300 = dma.vmem_to_hbm [thread:$0]  %s295_s2, 1024, %s532_s3, [#allocation3], %s466_s5, %s466_s5, %s467_s6  }
  0xdd   :  { %463 = dma.done.wait [#allocation3], 1024  }
  0xde   :  { %464 = vsyncadd [#allocation3], 4294966272 }
  0xdf   :  { %304 = vsyncpa [#allocation3], 1 }

</bundles_post_ra>
